<compile_context>
chip_gen: v6e
topology: v6e:2x2x1
jax: 0.10.0
libtpu: 0.0.40
codegen_flags: <defaults>
</compile_context>

<pallas_src>
import functools

import jax
import jax.numpy as jnp
from jax.experimental import pallas as pl
from jax.experimental.pallas import tpu as pltpu


def _round_up(n, m):
    return ((n + m - 1) // m) * m


def policy_net_kernel(x_ref, w1_ref, b1_ref, w2_ref, b2_ref, out_ref):
    # x_ref:   (n_states, Bt)     streamed per grid step, batch on lane axis
    # w1_ref:  (hidden, n_states) bf16, resident (constant index_map)
    # b1_ref:  (hidden, 1)        f32,  resident
    # w2_ref:  (n_actions, hidden) bf16, resident
    # b2_ref:  (n_actions, 1)     f32,  resident
    # out_ref: (n_actions, Bt)
    x = x_ref[...]
    if x.dtype != jnp.bfloat16:
        x = x.astype(jnp.bfloat16)

    # fc1 + ReLU: bf16 MXU operands, f32 accumulation, f32 elementwise.
    h = jnp.dot(w1_ref[...], x, preferred_element_type=jnp.float32) + b1_ref[...]
    h = jnp.maximum(h, 0.0)

    # fc2
    logits = jnp.dot(w2_ref[...], h.astype(jnp.bfloat16),
                     preferred_element_type=jnp.float32) + b2_ref[...]

    # Numerically stable softmax over actions (axis 0 = tiny sublane extent);
    # per-column (per-sample), so tail-padding lanes never contaminate valid ones.
    m = jnp.max(logits, axis=0, keepdims=True)
    e = jnp.exp(logits - m)
    denom = jnp.sum(e, axis=0, keepdims=True)
    out_ref[...] = (e * pl.reciprocal(denom)).astype(out_ref.dtype)  # exact recip


def prepare_params(w1, b1, w2, b2):
    """One-time glue hoisted out of the rollout hot path.

    PyTorch layout: w1 (hidden, n_states), w2 (n_actions, hidden) -- already the
    "output-major" layout the batch-on-lane kernel wants, so no transposes.
    Matmul operands are cast to bf16 once; biases become (rows, 1) f32 columns.
    """
    hidden = w1.shape[0]
    n_actions = w2.shape[0]
    w1k = jnp.asarray(w1, jnp.bfloat16)                 # (hidden, n_states)
    w2k = jnp.asarray(w2, jnp.bfloat16)                 # (n_actions, hidden)
    b1k = jnp.asarray(b1, jnp.float32).reshape(hidden, 1)
    b2k = jnp.asarray(b2, jnp.float32).reshape(n_actions, 1)
    return w1k, b1k, w2k, b2k


@functools.partial(jax.jit, static_argnames=("block_b",))
def policy_net_forward(x, w1k, b1k, w2k, b2k, *, block_b=4096):
    """x: (B, n_states), f32 or bf16. Returns (B, n_actions) softmax probs (f32)."""
    B, n_states = x.shape
    hidden = w1k.shape[0]
    n_actions = w2k.shape[0]

    # Batch on the lane axis. Ideally the rollout producer emits x already as
    # (n_states, B); when it cannot, this transpose fuses into the caller's jit.
    x_t = x.T                                            # (n_states, B)

    # Lane-dim tile: always a multiple of 128, capped by block_b, no bigger than
    # the (rounded-up) batch.  No wrapper pad: partial tail block is handled by
    # Pallas (masked writeback).
    Bt = min(_round_up(block_b, 128), _round_up(B, 128))
    grid = (pl.cdiv(B, Bt),)

    # x / out stream through the grid; weights & biases use constant index_maps
    # so they are DMA'd once and stay resident across grid steps.
    x_spec = pl.BlockSpec((n_states, Bt), lambda i: (0, i))
    w1_spec = pl.BlockSpec((hidden, n_states), lambda i: (0, 0))
    b1_spec = pl.BlockSpec((hidden, 1), lambda i: (0, 0))
    w2_spec = pl.BlockSpec((n_actions, hidden), lambda i: (0, 0))
    b2_spec = pl.BlockSpec((n_actions, 1), lambda i: (0, 0))
    out_spec = pl.BlockSpec((n_actions, Bt), lambda i: (0, i))

    # Advisory cost hint: this kernel is DMA/overhead-bound (K=4, N=2 matmuls
    # are inherently <4% MXU-efficient); tell XLA roughly what it moves/computes.
    cost = pl.CostEstimate(
        flops=2 * B * (n_states * hidden + hidden * n_actions),
        transcendentals=B * n_actions,
        bytes_accessed=(x.size * x.dtype.itemsize          # x stream
                        + B * n_actions * 4                 # out stream
                        + (w1k.size + w2k.size) * 2         # bf16 weights
                        + (b1k.size + b2k.size) * 4),       # f32 biases
    )

    out_t = pl.pallas_call(
        policy_net_kernel,
        out_shape=jax.ShapeDtypeStruct((n_actions, B), jnp.float32),
        grid=grid,
        in_specs=[x_spec, w1_spec, b1_spec, w2_spec, b2_spec],
        out_specs=out_spec,
        compiler_params=pltpu.CompilerParams(
            # Batch tiles are independent. On v7x, verify both TCs are active;
            # if not, switch to pltpu.CORE_PARALLEL or pl.core_map over a
            # tensorcore mesh for explicit 2-TC sharding.
            dimension_semantics=("parallel",),
        ),
        cost_estimate=cost,
    )(x_t, w1k, b1k, w2k, b2k)

    return out_t.T                                        # (B, n_actions)


def init_params(key, n_states, n_actions, hidden=128):
    # Deterministic synthetic init (PyTorch-default-like uniform ranges),
    # kept in PyTorch's (out_features, in_features) layout.
    k1, k2, k3, k4 = jax.random.split(key, 4)
    bound1 = 1.0 / jnp.sqrt(n_states)
    bound2 = 1.0 / jnp.sqrt(hidden)
    w1 = jax.random.uniform(k1, (hidden, n_states), jnp.float32, -bound1, bound1)
    b1 = jax.random.uniform(k2, (hidden,), jnp.float32, -bound1, bound1)
    w2 = jax.random.uniform(k3, (n_actions, hidden), jnp.float32, -bound2, bound2)
    b2 = jax.random.uniform(k4, (hidden,), jnp.float32, -bound2, bound2)[:n_actions]
    return w1, b1, w2, b2


if __name__ == "__main__":
    key = jax.random.PRNGKey(0)
    n_states, n_actions = 4, 2          # CartPole-like shapes
    batch = 300                         # NOT a multiple of the 128-lane tile

    kx, kp = jax.random.split(key)
    x = jax.random.normal(kx, (batch, n_states), jnp.float32)
    w1, b1, w2, b2 = init_params(kp, n_states, n_actions)

    # One-time param prep (bf16 cast / bias reshape), outside the hot path.
    params = prepare_params(w1, b1, w2, b2)

    # Small block_b so the demo exercises a multi-step grid (300 = 128+128+44)
    # plus a partial (masked-writeback) tail block.
    out = policy_net_forward(x, *params, block_b=128)
    out = jax.block_until_ready(out)

    # Reference in plain f32 JAX (tolerance loosened for bf16 MXU operands).
    h_ref = jnp.maximum(x @ w1.T + b1, 0.0)
    probs_ref = jax.nn.softmax(h_ref @ w2.T + b2, axis=-1)
    assert out.shape == (batch, n_actions)
    assert jnp.allclose(out, probs_ref, atol=1e-2), "mismatch vs reference"
    assert jnp.allclose(jnp.sum(out, axis=-1), 1.0, atol=1e-3)

    print("KERNEL_OK")
</pallas_src>

<mosaic_0001>
module attributes {stable_mosaic.version = 11 : i64} {
  func.func @policy_net_kernel(%arg0: i32, %arg1: memref<4x128xf32, #tpu.memory_space<vmem>>, %arg2: memref<128x4xbf16, #tpu.memory_space<vmem>>, %arg3: memref<128x1xf32, #tpu.memory_space<vmem>>, %arg4: memref<2x128xbf16, #tpu.memory_space<vmem>>, %arg5: memref<2x1xf32, #tpu.memory_space<vmem>>, %arg6: memref<2x128xf32, #tpu.memory_space<vmem>>) attributes {dimension_semantics = [#tpu.dimension_semantics<parallel>], iteration_bounds = array<i64: 3>, scalar_prefetch = 0 : i64, scratch_operands = 0 : i64, tpu.core_type = #tpu.core_type<tc>, window_params = [{transform_indices = @transform_0, window_bounds = array<i64: 4, 128>}, {pipeline_mode = #tpu.pipeline_mode<synchronous>, transform_indices = @transform_1, window_bounds = array<i64: 128, 4>}, {pipeline_mode = #tpu.pipeline_mode<synchronous>, transform_indices = @transform_2, window_bounds = array<i64: 128, 1>}, {pipeline_mode = #tpu.pipeline_mode<synchronous>, transform_indices = @transform_3, window_bounds = array<i64: 2, 128>}, {pipeline_mode = #tpu.pipeline_mode<synchronous>, transform_indices = @transform_4, window_bounds = array<i64: 2, 1>}, {transform_indices = @transform_5, window_bounds = array<i64: 2, 128>}]} {
    %c0 = arith.constant 0 : index
    %c0_0 = arith.constant 0 : index
    %0 = vector.load %arg1[%c0, %c0_0] : memref<4x128xf32, #tpu.memory_space<vmem>>, vector<4x128xf32>
    %1 = arith.truncf %0 : vector<4x128xf32> to vector<4x128xbf16>
    %c0_1 = arith.constant 0 : index
    %c0_2 = arith.constant 0 : index
    %2 = vector.load %arg2[%c0_1, %c0_2] : memref<128x4xbf16, #tpu.memory_space<vmem>>, vector<128x4xbf16>
    %cst = arith.constant dense<0.000000e+00> : vector<128x128xf32>
    %3 = tpu.matmul %2, %1, %cst {dimension_numbers = #tpu.dot_dimension_numbers<[1], [0], [0], [1], [0, 0, 1, 1], [], []>} : vector<128x4xbf16>, vector<4x128xbf16>, vector<128x128xf32> -> vector<128x128xf32>
    %c0_3 = arith.constant 0 : index
    %c0_4 = arith.constant 0 : index
    %4 = vector.load %arg3[%c0_3, %c0_4] : memref<128x1xf32, #tpu.memory_space<vmem>>, vector<128x1xf32>
    %5 = vector.broadcast %4 : vector<128x1xf32> to vector<128x128xf32>
    %6 = arith.addf %3, %5 : vector<128x128xf32>
    %cst_5 = arith.constant 0.000000e+00 : f32
    %7 = vector.broadcast %cst_5 : f32 to vector<128x128xf32>
    %8 = arith.maximumf %6, %7 : vector<128x128xf32>
    %c0_6 = arith.constant 0 : index
    %c0_7 = arith.constant 0 : index
    %9 = vector.load %arg4[%c0_6, %c0_7] : memref<2x128xbf16, #tpu.memory_space<vmem>>, vector<2x128xbf16>
    %10 = arith.truncf %8 : vector<128x128xf32> to vector<128x128xbf16>
    %cst_8 = arith.constant dense<0.000000e+00> : vector<2x128xf32>
    %11 = tpu.matmul %9, %10, %cst_8 {dimension_numbers = #tpu.dot_dimension_numbers<[1], [0], [0], [1], [0, 0, 1, 1], [], []>} : vector<2x128xbf16>, vector<128x128xbf16>, vector<2x128xf32> -> vector<2x128xf32>
    %c0_9 = arith.constant 0 : index
    %c0_10 = arith.constant 0 : index
    %12 = vector.load %arg5[%c0_9, %c0_10] : memref<2x1xf32, #tpu.memory_space<vmem>>, vector<2x1xf32>
    %13 = vector.broadcast %12 : vector<2x1xf32> to vector<2x128xf32>
    %14 = arith.addf %11, %13 : vector<2x128xf32>
    %cst_11 = arith.constant dense<0xFF800000> : vector<128xf32>
    %15 = vector.multi_reduction <maximumf>, %14, %cst_11 [0] : vector<2x128xf32> to vector<128xf32>
    %16 = vector.shape_cast %15 : vector<128xf32> to vector<1x128xf32>
    %17 = vector.broadcast %16 : vector<1x128xf32> to vector<2x128xf32>
    %18 = arith.subf %14, %17 : vector<2x128xf32>
    %19 = math.exp %18 : vector<2x128xf32>
    %cst_12 = arith.constant dense<0.000000e+00> : vector<128xf32>
    %20 = vector.multi_reduction <add>, %19, %cst_12 [0] : vector<2x128xf32> to vector<128xf32>
    %21 = vector.shape_cast %20 : vector<128xf32> to vector<1x128xf32>
    %22 = tpu.reciprocal %21 : vector<1x128xf32> -> vector<1x128xf32>
    %23 = vector.broadcast %22 : vector<1x128xf32> to vector<2x128xf32>
    %24 = arith.mulf %19, %23 : vector<2x128xf32>
    %c0_13 = arith.constant 0 : index
    %c0_14 = arith.constant 0 : index
    %25 = vector.load %arg6[%c0_13, %c0_14] : memref<2x128xf32, #tpu.memory_space<vmem>>, vector<2x128xf32>
    tpu.vector_store %arg6[%c0_13, %c0_14], %24 {strides = array<i32>} : memref<2x128xf32, #tpu.memory_space<vmem>>, vector<2x128xf32>,
    return
  }
  func.func @transform_0(%arg0: i32) -> (i32, i32) {
    %c0_i32 = arith.constant 0 : i32
    %c0_i32_0 = arith.constant 0 : i32
    return %c0_i32, %arg0 : i32, i32
  }
  func.func @transform_1(%arg0: i32) -> (i32, i32) {
    %c0_i32 = arith.constant 0 : i32
    %c0_i32_0 = arith.constant 0 : i32
    %c0_i32_1 = arith.constant 0 : i32
    return %c0_i32, %c0_i32_0 : i32, i32
  }
  func.func @transform_2(%arg0: i32) -> (i32, i32) {
    %c0_i32 = arith.constant 0 : i32
    %c0_i32_0 = arith.constant 0 : i32
    %c0_i32_1 = arith.constant 0 : i32
    return %c0_i32, %c0_i32_0 : i32, i32
  }
  func.func @transform_3(%arg0: i32) -> (i32, i32) {
    %c0_i32 = arith.constant 0 : i32
    %c0_i32_0 = arith.constant 0 : i32
    %c0_i32_1 = arith.constant 0 : i32
    return %c0_i32, %c0_i32_0 : i32, i32
  }
  func.func @transform_4(%arg0: i32) -> (i32, i32) {
    %c0_i32 = arith.constant 0 : i32
    %c0_i32_0 = arith.constant 0 : i32
    %c0_i32_1 = arith.constant 0 : i32
    return %c0_i32, %c0_i32_0 : i32, i32
  }
  func.func @transform_5(%arg0: i32) -> (i32, i32) {
    %c0_i32 = arith.constant 0 : i32
    %c0_i32_0 = arith.constant 0 : i32
    return %c0_i32, %arg0 : i32, i32
  }
}

</mosaic_0001>

<bundles_post_ra>
// kernel: policy_net_forward.1
= control target key start
LH: loop header
LB: loop body
LE: loop exit
PB: predicated region body
PF: predicated region fallthrough
CT: control target
= control target key end

     0   :  { %10 = vsyncpa [#allocation3], 0  ;;  %s1095_s0 = inlined_call_operand.vmem [shape: f32[4,300], index: 0, kind: input, shape index: {}]   ;;  %s1096_s1 = inlined_call_operand.vmem [shape: bf16[128,4], index: 1, kind: input, shape index: {}]   ;;  %s1097_s2 = inlined_call_operand.vmem [shape: f32[128,1], index: 2, kind: input, shape index: {}]   ;;  %s1098_s3 = inlined_call_operand.vmem [shape: bf16[2,128], index: 3, kind: input, shape index: {}]   ;;  %s1099_s4 = inlined_call_operand.vmem [shape: f32[2,1], index: 4, kind: input, shape index: {}]   ;;  %s1100_s5 = inlined_call_operand.hbm [shape: f32[2,300], index: 5, kind: output, shape index: {}]  }
   0x1   :  { %12 = vsyncpa [#allocation3 + $0x1], 0  ;;  %s900_s18 = smov 0   ;;  %s902_s19 = smov 0  }
   0x2   :  { %s904_s20 = smov 0   ;;  %s906_s21 = smov 0  }
   0x3 LB: > { %s921_s22 = sadd.s32 4294967295, %s864_s21   ;;  %s665_s23 = sadd.s32 4294967294, %s864_s21   ;;  %s864_s21 = sphi %s906_s21, %s1106_s21   ;;  %s860_s20 = sphi %s904_s20, %s1105_s20   ;;  %s856_s19 = sphi %s902_s19, %s1104_s19   ;;  %s852_s18 = sphi %s900_s18, %s1103_s18  }
   0x4   : > { %s925_s24 = sadd.s32 1, %s864_s21   ;;  %s135_s25 = sadd.s32 1, %s860_s20 }
   0x5   : > { %s132_s26 = ssub.s32 %s864_s21, %s925_s24  ;;  %p145_p0 = scmp.ne.s32.totalorder %s860_s20, %s856_s19 }
   0x6   : > { %p133_p1 = scmp.eq.s32.totalorder %s132_s26, 0  ;;  %p146_p2 = scmp.eq.s32.totalorder %s921_s22, 2 }
   0x7   : > { %p151_p3 = scmp.ne.s32.totalorder %s856_s19, %s852_s18  ;;  %p152_p4 = scmp.eq.s32.totalorder %s665_s23, 2 }
   0x8   : > { %s936_s27 = scalar_select %p133_p1, %s860_s20, %s135_s25  }
   0x9   : > { %p938_p5 = por %p146_p2, %p145_p0  ;;  %p942_p6 = por %p152_p4, %p151_p3 }
   0xa   : > { %p668_p7 = scmp.ge.s32.totalorder %s864_s21, 1  ;;  %p189_p8 = scmp.lt.s32.totalorder %s864_s21, 4 }
   0xc   : > { %p190_p9 = pnand %p668_p7, %p189_p8 }
   0xd   : > { %p216_p10 = scmp.lt.s32.totalorder (!%p190_p9), %s921_s22, 2  ;;  %s213_s14 = sand.u32 (!%p190_p9), 1, %s856_s19  }
   0xe   : > { %193 = sbr.rel (%p190_p9) target bundleno = 556 (0x22c), region = 40  ;;  %s669_s15 = sshll.u32 (!%p190_p9), %s213_s14, 1 }
   0xf   : > { %s688_s16 = sshll.u32 (!%p190_p9), %s921_s22, 5  ;;  %s215_s17 = scalar_lea.vmem (!%p190_p9), [#allocation2], %s669_s15 }
  0x10   : > { %s606_s23 = sshll.u32 (!%p190_p9), %s215_s17, 4  ;;  %s604_s30 = scalar_lea.hbm (!%p190_p9), %s1100_s5, %s688_s16  ;;  %s607_s23 = int_to_ptr.vmem [resolvable:$true] %s606_s23 }
  0x11   : > { %s593_s6 = scalar_lea.sflag (!%p190_p9), [#allocation3], %s213_s14 }
  0x13   : > { %v792_v0 = vld [vmem:[%s1096_s1] sm:$0xff]   ;;  %vm375_vm0 = vcmask 31744   ;;  %s217_s7 = scalar_select %p216_p10, %s921_s22, 2  ;;  %v866_v1 = vmov 0   ;;  %vm400_vm1 = vcmask 1041408   ;;  %v253_v4 = vld [vmem:[%s1097_s2 + $0x70] sm:$0xff] }
  0x14   : > { %711 = vmatprep.mubr.msk.bf16.mxu0 %vm375_vm0, %v792_v0  ;;  %790 = vset.pattern.permute.xlu0 %v866_v1  ;;  %v793_v6 = vld [vmem:[%s1096_s1 + $0x8] sm:$0xff]   ;;  %v251_v7 = vld [vmem:[%s1097_s2 + $0x60] sm:$0xff]  ;;  %v794_v8 = vld [vmem:[%s1096_s1 + $0x10] sm:$0xff]   ;;  %v867_v29 = vmov 0.0   ;;  %vm868_vm2 = vmmov 0  }
  0x15   : > { %s670_s8 = sshll.u32 %s217_s7, 2  ;;  %791 = vset.pattern.permute.xlu1 %v866_v1  ;;  %327 = vperm.xlu0 %790, %v253_v4   ;;  %v254_v9 = vld [vmem:[%s1097_s2 + $0x78] sm:$0xff]  ;;  %v252_v10 = vld [vmem:[%s1097_s2 + $0x68] sm:$0xff]  ;;  %v249_v11 = vld [vmem:[%s1097_s2 + $0x50] sm:$0xff]  ;;  %s804_s7 = scalar_lea.vmem %s607_s23, 32 }
  0x16   : > { %s219_s11 = scalar_lea.vmem %s1095_s0, %s670_s8  ;;  %317 = vperm.xlu1 %791, %v251_v7   ;;  %v250_v12 = vld [vmem:[%s1097_s2 + $0x58] sm:$0xff]  ;;  %v796_v14 = vld [vmem:[%s1096_s1 + $0x20] sm:$0xff]   ;;  %v248_v16 = vld [vmem:[%s1097_s2 + $0x48] sm:$0xff]  ;;  %727 = vmatprep.subr.bf16.mxu1 %v867_v29  ;;  %p805_p11 = scmp.ne.s32.totalorder %s607_s23, %s804_s7 }
  0x17   : > { %v221_v2 = vld [vmem:[%s219_s11] sm:$0xf]  ;;  %v795_v13 = vld [vmem:[%s1096_s1 + $0x18] sm:$0xff]   ;;  %v245_v17 = vld [vmem:[%s1097_s2 + $0x30] sm:$0xff]  ;;  %743 = vmatprep.mubr.msk.bf16.mxu1 %vm868_vm2, %v867_v29  ;;  %s869_s8 = smov [#allocation2]  }
  0x18   : > { %v222_v3 = vpack.c.bf16 %v221_v2, %v221_v2  ;;  %v247_v15 = vld [vmem:[%s1097_s2 + $0x40] sm:$0xff]  ;;  %v246_v18 = vld [vmem:[%s1097_s2 + $0x38] sm:$0xff]  ;;  %v797_v19 = vld [vmem:[%s1096_s1 + $0x28] sm:$0xff]   ;;  %p806_p12 = pnand %p805_p11, %p938_p5  ;;  %s808_s9 = sshll.u32 %s869_s8, 4  ;;  %s809_s9 = int_to_ptr.vmem [resolvable:$false] %s808_s9 }
  0x19   : > { %332 = vperm.xlu0 %790, %v254_v9   ;;  %v798_v20 = vld [vmem:[%s1096_s1 + $0x30] sm:$0xff]   ;;  %v243_v21 = vld [vmem:[%s1097_s2 + $0x20] sm:$0xff]  ;;  %v244_v22 = vld [vmem:[%s1097_s2 + $0x28] sm:$0xff]  ;;  %s810_s22 = scalar_lea.vmem %s809_s9, 64  ;;  %p811_p0 = scmp.lt.s32.totalorder %s607_s23, %s809_s9 }
  0x1a   : > { %747 = vmatprep.subr.msk.bf16.mxu0 %vm400_vm1, %v222_v3  ;;  %v402_v5 = vsel %vm400_vm1, %v222_v3, 0  ;;  %322 = vperm.xlu1 %791, %v252_v10   ;;  %v241_v23 = vld [vmem:[%s1097_s2 + $0x10] sm:$0xff]  ;;  %v242_v24 = vld [vmem:[%s1097_s2 + $0x18] sm:$0xff]  ;;  %v239_v26 = vld [vmem:[%s1097_s2] sm:$0xff]  ;;  %p807_p13 = pneg %p806_p12  ;;  %p812_p1 = scmp.lt.s32.totalorder %s810_s22, %s804_s7 }
  0x1b   : > { %710 = vmatpush3.bf16.msra.mxu0 %v402_v5  ;;  %v799_v25 = vld [vmem:[%s1096_s1 + $0x38] sm:$0xff]   ;;  %v240_v27 = vld [vmem:[%s1097_s2 + $0x8] sm:$0xff]  ;;  %v526_v28 = vld [vmem:[%s1099_s4] sm:$0x3] }
  0x1c   : > { %p813_p2 = por %p812_p1, %p811_p0 }
  0x1d   : > { %307 = vperm.xlu0 %790, %v249_v11  }
  0x1e   : > { %712 = vmatmul.mubr.msk.bf16.vlgmr.msra.gmra.mxu0 %vm375_vm0, %v793_v6  ;;  %312 = vperm.xlu1 %791, %v250_v12   ;;  %p814_p3 = pnand %p813_p2, %p807_p13 }
  0x1f   : > { %715 = vmatprep.mubr.msk.bf16.mxu0 %vm375_vm0, %v794_v8 }
  0x21   : > { %297 = vperm.xlu0 %790, %v247_v15  }
  0x22   : > { %302 = vperm.xlu1 %791, %v248_v16  }
  0x25   : > { %287 = vperm.xlu0 %790, %v245_v17  }
  0x26   : > { %716 = vmatmul.mubr.msk.bf16.gmra.mxu0 %vm375_vm0, %v795_v13  ;;  %292 = vperm.xlu1 %791, %v246_v18  }
  0x27   : > { %719 = vmatprep.mubr.msk.bf16.mxu0 %vm375_vm0, %v796_v14 }
  0x29   : > { %277 = vperm.xlu0 %790, %v243_v21  }
  0x2a   : > { %282 = vperm.xlu1 %791, %v244_v22  }
  0x2d   : > { %267 = vperm.xlu0 %790, %v241_v23  }
  0x2e   : > { %720 = vmatmul.mubr.msk.bf16.gmra.mxu0 %vm375_vm0, %v797_v19  ;;  %272 = vperm.xlu1 %791, %v242_v24  }
  0x2f   : > { %723 = vmatprep.mubr.msk.bf16.mxu0 %vm375_vm0, %v798_v20 }
  0x31   : > { %257 = vperm.xlu0 %790, %v239_v26  }
  0x32   : > { %262 = vperm.xlu1 %791, %v240_v27  }
  0x35   : > { %529 = vperm.xlu0 %790, %v526_v28  }
  0x36   : > { %724 = vmatmul.mubr.msk.bf16.gmra.mxu0 %vm375_vm0, %v799_v25 }
  0x90   : > { %v328_v36 = vpop.permute.xlu0 %327 }
  0x91   : > { %v318_v34 = vpop.permute.xlu1 %317 }
  0x94   : > { %v333_v41 = vpop.permute.xlu0 %332 }
  0x95   : > { %v323_v39 = vpop.permute.xlu1 %322 }
  0x98   : > { %v308_v46 = vpop.permute.xlu0 %307 }
  0x99   : > { %v313_v44 = vpop.permute.xlu1 %312 }
  0x9c   : > { %v298_v52 = vpop.permute.xlu0 %297 }
  0x9d   : > { %v303_v49 = vpop.permute.xlu1 %302 }
  0xa0   : > { %v288_v0 = vpop.permute.xlu0 %287 }
  0xa1   : > { %v293_v60 = vpop.permute.xlu1 %292 }
  0xa4   : > { %v278_v9 = vpop.permute.xlu0 %277 }
  0xa5   : > { %v283_v6 = vpop.permute.xlu1 %282 }
  0xa8   : > { %v268_v19 = vpop.permute.xlu0 %267 }
  0xa9   : > { %v273_v15 = vpop.permute.xlu1 %272 }
  0xac   : > { %v258_v28 = vpop.permute.xlu0 %257 }
  0xad   : > { %v263_v25 = vpop.permute.xlu1 %262 }
  0xde   : > { %v1040_v30 = vpop.f32.mrf.mxu0 }
  0xdf   : > { %v447_v26 = vadd.f32 %v1040_v30, %v268_v19 }
  0xe0   : > { %v1042_v31 = vpop.f32.mrf.mxu0 }
  0xe2   : > { %v714_v32 = vpop.f32.mrf.mxu0 }
  0xe3   : > { %v450_v22 = vadd.f32 %v714_v32, %v273_v15 }
  0xe4   : > { %v1044_v33 = vpop.f32.mrf.mxu0 }
  0xe6   : > { %v717_v35 = vpop.f32.mrf.mxu0 }
  0xe7   : > { %v463_v13 = vadd.f32 %v717_v35, %v288_v0  ;;  %v442_v35 = vadd.f32 %v1044_v33, %v263_v25  ;;  %v530_v33 = vpop.permute.xlu0 %529 }
  0xe8   : > { %v454_v37 = vpop.f32.mrf.mxu0 }
  0xe9   : > { %v507_v20 = vmax.f32 %v463_v13, 0.0  ;;  %v455_v21 = vadd.f32 %v454_v37, %v278_v9  ;;  %v439_v37 = vadd.f32 %v1042_v31, %v258_v28 }
  0xea   : > { %v718_v38 = vpop.f32.mrf.mxu0 }
  0xeb   : > { %v466_v10 = vadd.f32 %v718_v38, %v293_v60  ;;  %v505_v27 = vmax.f32 %v455_v21, 0.0  ;;  %v503_v38 = vmax.f32 %v447_v26, 0.0 }
  0xec   : > { %v457_v40 = vpop.f32.mrf.mxu0 }
  0xed   : > { %v508_v16 = vmax.f32 %v466_v10, 0.0  ;;  %v458_v17 = vadd.f32 %v457_v40, %v283_v6  ;;  %v501_v40 = vmax.f32 %v439_v37, 0.0 }
  0xee   : > { %v721_v42 = vpop.f32.mrf.mxu0 }
  0xef   : > { %v479_v1 = vadd.f32 %v721_v42, %v308_v46  ;;  %v521_v23 = vpack.c.bf16 %v508_v16, %v507_v20  ;;  %v506_v24 = vmax.f32 %v458_v17, 0.0 }
  0xf0   : > { %v470_v43 = vpop.f32.mrf.mxu0 }
  0xf1   : > { %v511_v7 = vmax.f32 %v479_v1, 0.0  ;;  %v471_v8 = vadd.f32 %v470_v43, %v298_v52 }
  0xf2   : > { %v722_v45 = vpop.f32.mrf.mxu0 }
  0xf3   : > { %v482_v61 = vadd.f32 %v722_v45, %v313_v44  ;;  %v509_v14 = vmax.f32 %v471_v8, 0.0 }
  0xf4   : > { %v473_v47 = vpop.f32.mrf.mxu0 }
  0xf5   : > { %v512_v3 = vmax.f32 %v482_v61, 0.0  ;;  %v474_v4 = vadd.f32 %v473_v47, %v303_v49 }
  0xf6   : > { %v725_v48 = vpop.f32.mrf.mxu0 }
  0xf7   : > { %v495_v51 = vadd.f32 %v725_v48, %v328_v36  ;;  %v523_v11 = vpack.c.bf16 %v512_v3, %v511_v7  ;;  %v510_v12 = vmax.f32 %v474_v4, 0.0  ;;  %v520_v36 = vpack.c.bf16 %v506_v24, %v505_v27 }
  0xf8   : > { %v486_v50 = vpop.f32.mrf.mxu0 }
  0xf9   : > { %v515_v56 = vmax.f32 %v495_v51, 0.0  ;;  %v487_v57 = vadd.f32 %v486_v50, %v318_v34  ;;  %v522_v18 = vpack.c.bf16 %v510_v12, %v509_v14  ;;  %v504_v34 = vmax.f32 %v450_v22, 0.0 }
  0xfa   : > { %v726_v53 = vpop.f32.mrf.mxu0 }
  0xfb   : > { %v498_v54 = vadd.f32 %v726_v53, %v333_v41  ;;  %v513_v2 = vmax.f32 %v487_v57, 0.0  ;;  %v519_v32 = vpack.c.bf16 %v504_v34, %v503_v38  ;;  %v517_v41 = vld [vmem:[%s1098_s3] sm:$0x1] }
  0xfc   : > { %v489_v55 = vpop.f32.mrf.mxu0 }
  0xfd   : > { %v516_v58 = vmax.f32 %v498_v54, 0.0  ;;  %v490_v59 = vadd.f32 %v489_v55, %v323_v39  ;;  %v502_v39 = vmax.f32 %v442_v35, 0.0 }
  0xff   : > { %v514_v62 = vmax.f32 %v490_v59, 0.0  ;;  %v525_v63 = vpack.c.bf16 %v516_v58, %v515_v56  ;;  %v518_v30 = vpack.c.bf16 %v502_v39, %v501_v40 }
 0x101   : > { %728 = vmatpush3.bf16.msra.mxu1 %v525_v63  ;;  %v524_v5 = vpack.c.bf16 %v514_v62, %v513_v2 }
 0x102   : > { %729 = vmatprep.subr.bf16.mxu1 %v867_v29 }
 0x105   : > { %730 = vmatpush3.bf16.msra.mxu1 %v524_v5 }
 0x106   : > { %731 = vmatprep.subr.bf16.mxu1 %v867_v29 }
 0x109   : > { %732 = vmatpush3.bf16.msra.mxu1 %v523_v11 }
 0x10a   : > { %733 = vmatprep.subr.bf16.mxu1 %v867_v29 }
 0x10d   : > { %734 = vmatpush3.bf16.msra.mxu1 %v522_v18 }
 0x10e   : > { %735 = vmatprep.subr.bf16.mxu1 %v867_v29 }
 0x111   : > { %736 = vmatpush3.bf16.msra.mxu1 %v521_v23 }
 0x112   : > { %737 = vmatprep.subr.bf16.mxu1 %v867_v29 }
 0x115   : > { %738 = vmatpush3.bf16.msra.mxu1 %v520_v36 }
 0x116   : > { %739 = vmatprep.subr.bf16.mxu1 %v867_v29 }
 0x119   : > { %740 = vmatpush3.bf16.msra.mxu1 %v519_v32 }
 0x11a   : > { %741 = vmatprep.subr.bf16.mxu1 %v867_v29 }
 0x11d   : > { %742 = vmatpush3.bf16.msra.mxu1 %v518_v30 }
 0x120   : > { %744 = vmatmul.mubr.bf16.vlgmr.msra.gmra.mxu1 %v517_v41 }
 0x1e0   : > { %v566_v42 = vpop.f32.mrf.mxu1 }
 0x1e1   : > { %v567_v43 = vadd.f32 %v566_v42, %v530_v33 }
 0x1e2   : > { %v745_v31 = vpop.f32.mrf.mxu1 }
 0x1e3   : > { %v572_v44 = vsel %vm400_vm1, %v567_v43, -inf }
 0x1e4   : > { %v573_v45 = vrot.slane %v572_v44, 4  ;;  %v569_v46 = vpop.f32.mrf.mxu1 }
 0x1e6   : > { %v574_v47 = vmax.f32 %v572_v44, %v573_v45  ;;  %v746_v48 = vpop.f32.mrf.mxu1 }
 0x1e8   : > { %v575_v49 = vrot.slane %v574_v47, 2 }
 0x1ea   : > { %v576_v29 = vmax.f32 %v574_v47, %v575_v49 }
 0x1ec   : > { %v577_v50 = vrot.slane %v576_v29, 1 }
 0x1ee   : > { %v578_v51 = vmax.f32 %v576_v29, %v577_v50 }
 0x1f0   : > { %v579_v52 = vsub.f32 %v567_v43, %v578_v51 }
 0x1f2   : > { %v580_v53 = vmul.f32 1.442695, %v579_v52 }
 0x1f4   : > { %800 = vpow2.f32 %v580_v53 }
 0x201   : > { %v801_v54 = vpop.eup %800 }
 0x202   : > { %v582_v55 = vsel %vm400_vm1, %v801_v54, 0.0 }
 0x203   : > { %v583_v56 = vrot.slane %v582_v55, 4 }
 0x205   : > { %v584_v57 = vadd.f32 %v583_v56, %v582_v55 }
 0x207   : > { %v585_v58 = vrot.slane %v584_v57, 2 }
 0x209   : > { %v586_v59 = vadd.f32 %v585_v58, %v584_v57 }
 0x20b   : > { %v587_v60 = vrot.slane %v586_v59, 1 }
 0x20d   : > { %v588_v61 = vadd.f32 %v587_v60, %v586_v59 }
 0x20f   : > { %802 = vrcp.f32 %v588_v61 }
 0x21c   : > { %v803_v62 = vpop.eup %802 }
 0x21d   : > { %v590_v63 = vmul.f32 %v803_v62, %v801_v54 }
 0x21f   : > { %591 = vst [vmem:[%s215_s17] sm:$0x3] %v590_v63 }
 0x220   : > { %817 = shalt.err (!%p814_p3)
}
 0x221   : > { %s818_s10 = scalar_lea.hbm %s604_s30, 32  ;;  %s822_s13 = scalar_lea.hbm %s1100_s5, 96 }
 0x222   : > { %p819_p4 = scmp.ne.s32.totalorder %s604_s30, %s818_s10  ;;  %p823_p9 = scmp.lt.s32.totalorder %s604_s30, %s1100_s5 }
 0x223   : > { %p824_p10 = scmp.lt.s32.totalorder %s822_s13, %s818_s10 }
 0x224   : > { %p820_p7 = pnand %p819_p4, %p938_p5 }
 0x225   : > { %p825_p11 = por %p824_p10, %p823_p9 }
 0x226   : > { %p821_p8 = pneg %p820_p7 }
 0x228   : > { %p826_p12 = pnand %p825_p11, %p821_p8 }
 0x22a   : > { %829 = shalt.err (!%p826_p12)
}
 0x22b   : > { %748 = dma.vmem_to_hbm [thread:$0]  (%p938_p5), %s607_s23, 32, %s604_s30, %s593_s6  }
 0x22c PF: > { %p754_p13 = scmp.ge.s32.totalorder %s864_s21, 2  ;;  %s618_s16 = sand.u32 1, %s852_s18  }
 0x22d   : > { %s619_s17 = scalar_lea.sflag [#allocation3], %s618_s16 }
 0x22e   : > { %p751_p0 = pnand %p754_p13, %p942_p6 }
 0x230   : > { %p752_p1 = pneg %p751_p0 }
 0x232   : > { %847 = dma.done.wait (%p752_p1), %s619_s17, 32  }
 0x233   : > { %849 = vsyncadd (%p752_p1), %s619_s17, 4294967264  ;;  %p15_p2 = scmp.ge.s32.totalorder %s925_s24, 5   ;;  %s1103_s18 = smov %s856_s19 }
 0x234   : > { %s1104_s19 = smov %s860_s20  ;;  %s1105_s20 = smov %s936_s27 }
 0x235   : > { %s1106_s21 = smov %s925_s24  ;;  %17 = sbr.rel (!%p15_p2) target bundleno = 3 (0x3), region = 75 }
 0x23a   :  { %624 = vsyncpa [#allocation3], 1 }
 0x23b   :  { %626 = vsyncpa [#allocation3 + $0x1], 1 }

</bundles_post_ra>
